<compile_context>
chip_gen: v7x
topology: tpu7x:2x2x1
jax: 0.10.0
libtpu: 0.0.40
codegen_flags: <defaults>
</compile_context>

<pallas_src>
import functools

import jax
import jax.numpy as jnp
from jax.experimental import pallas as pl
from jax.experimental.pallas import tpu as pltpu

BN_EPS = 1e-5
COMPUTE_DTYPE = jnp.bfloat16   # MXU input dtype (accumulation stays f32)


# ----------------------------------------------------------------------------
# Kernel
# ----------------------------------------------------------------------------
def _fused_block_kernel(x_ref, m_ref,
                        w1_ref, s1_ref, b1_ref,
                        w2_ref, s2_ref, b2_ref,
                        w3_ref, s3_ref, b3_ref,
                        o_ref, *, H, W):
    """Fused (conv3x3+BN+ReLU) x2 + (conv3x3+sigmoid) for one batch element.

    x_ref : (1, Cin, H*W)       input activations, channels on sublanes
    m_ref : (9, 1, H*W)         per-tap validity masks (padding=1 halo), bf16
    w*_ref: (Cout_l, 9*Cin_l)   im2col-ordered weights, bf16
    s*_ref: (Cout_l, 1)         folded BN scale (f32)
    b*_ref: (Cout_l, 1)         folded BN shift / bias (f32)
    o_ref : (1, Cout, H*W)      output (lane-dense: last dim = H*W)
    """
    HW = H * W

    def roll_lanes(a, off):
        # y[:, p] = a[:, (p + off) mod HW]  (static cyclic shift on the lane
        # axis; wrap positions are killed by the tap mask).
        off = off % HW
        if off == 0:
            return a
        return jnp.concatenate([a[:, off:], a[:, :off]], axis=1)

    def im2col(a_bf16):
        # a_bf16: (C, HW) bf16 -> (9*C, HW) bf16; tap order (dy, dx) matches
        # the weight reshape (Cout, 3, 3, Cin) -> (Cout, 9*Cin).
        parts = []
        t = 0
        for dy in (-1, 0, 1):
            for dx in (-1, 0, 1):
                off = dy * W + dx
                shifted = roll_lanes(a_bf16, off)
                if off != 0:                      # center tap: mask is all-ones
                    shifted = shifted * m_ref[t]  # zero halo / wrap positions
                parts.append(shifted)
                t += 1
        return jnp.concatenate(parts, axis=0)

    def layer(a_f32, w_ref, s_ref, b_ref, act):
        cols = im2col(a_f32.astype(COMPUTE_DTYPE))             # (9*Cin, HW) bf16
        acc = jnp.dot(w_ref[...], cols,
                      preferred_element_type=jnp.float32)      # (Cout, HW) f32
        y = acc * s_ref[...] + b_ref[...]                      # folded BN / bias
        if act == "relu":
            return jnp.maximum(y, 0.0)
        return jax.nn.sigmoid(y)

    x = x_ref[0].astype(jnp.float32)                           # (Cin, HW)
    h1 = layer(x,  w1_ref, s1_ref, b1_ref, "relu")
    h2 = layer(h1, w2_ref, s2_ref, b2_ref, "relu")
    y3 = layer(h2, w3_ref, s3_ref, b3_ref, "sigmoid")
    o_ref[0] = y3.astype(o_ref.dtype)


# ----------------------------------------------------------------------------
# Wrapper
# ----------------------------------------------------------------------------
def _make_tap_masks(H, W):
    """(9, 1, H*W) bf16 masks: 1 where the (dy, dx)-shifted pixel is in-bounds."""
    hh = jnp.arange(H).reshape(H, 1)
    ww = jnp.arange(W).reshape(1, W)
    masks = []
    for dy in (-1, 0, 1):
        for dx in (-1, 0, 1):
            valid = ((hh + dy >= 0) & (hh + dy < H) &
                     (ww + dx >= 0) & (ww + dx < W))
            masks.append(valid.reshape(1, H * W))
    return jnp.stack(masks, axis=0).astype(COMPUTE_DTYPE)


def output_conv_block(x_nchw, params):
    """Forward pass.  x_nchw: (N, Cin, H, W) f32 -> (N, Cout, H, W) f32."""
    (w1, s1, b1), (w2, s2, b2), (w3, s3, b3) = params
    N, Cin, H, W = x_nchw.shape
    HW = H * W
    Cout = w3.shape[0]

    x_flat = x_nchw.reshape(N, Cin, HW).astype(jnp.float32)    # NCHW-flat (free)
    masks = _make_tap_masks(H, W)

    kernel = functools.partial(_fused_block_kernel, H=H, W=W)
    const = lambda n: (0, 0)   # noqa: E731  (constant operands: stay resident)

    out_flat = pl.pallas_call(
        kernel,
        out_shape=jax.ShapeDtypeStruct((N, Cout, HW), jnp.float32),
        grid_spec=pltpu.PrefetchScalarGridSpec(
            num_scalar_prefetch=0,
            grid=(N,),
            in_specs=[
                pl.BlockSpec((1, Cin, HW), lambda n: (n, 0, 0)),
                pl.BlockSpec((9, 1, HW), lambda n: (0, 0, 0)),
                pl.BlockSpec(w1.shape, const), pl.BlockSpec(s1.shape, const),
                pl.BlockSpec(b1.shape, const),
                pl.BlockSpec(w2.shape, const), pl.BlockSpec(s2.shape, const),
                pl.BlockSpec(b2.shape, const),
                pl.BlockSpec(w3.shape, const), pl.BlockSpec(s3.shape, const),
                pl.BlockSpec(b3.shape, const),
            ],
            out_specs=pl.BlockSpec((1, Cout, HW), lambda n: (n, 0, 0)),
        ),
        compiler_params=pltpu.CompilerParams(
            dimension_semantics=("parallel",)),
    )(x_flat, masks, w1, s1, b1, w2, s2, b2, w3, s3, b3)

    return out_flat.reshape(N, Cout, H, W)


# ----------------------------------------------------------------------------
# Parameters (PyTorch-layout raw params + kernel-ready folded params)
# ----------------------------------------------------------------------------
def init_params(key, in_channels, out_channels, mid_channels=None):
    """Deterministic synthetic parameters matching the PyTorch module shapes."""
    if mid_channels is None:
        mid_channels = in_channels
    ks = jax.random.split(key, 6)

    def conv(kw, kb, cin, cout):
        w = 0.1 * jax.random.normal(kw, (cout, cin, 3, 3), jnp.float32)  # OIHW
        b = 0.1 * jax.random.normal(kb, (cout,), jnp.float32)
        return w, b

    w1, b1 = conv(ks[0], ks[1], in_channels, mid_channels)
    w2, b2 = conv(ks[2], ks[3], mid_channels, mid_channels)
    w3, b3 = conv(ks[4], ks[5], mid_channels, out_channels)

    def bn(c):
        return dict(gamma=jnp.ones((c,), jnp.float32),
                    beta=jnp.zeros((c,), jnp.float32),
                    mean=jnp.zeros((c,), jnp.float32),
                    var=jnp.ones((c,), jnp.float32))

    return [dict(w=w1, b=b1, bn=bn(mid_channels)),
            dict(w=w2, b=b2, bn=bn(mid_channels)),
            dict(w=w3, b=b3, bn=None)]


def fold_params(raw_layers):
    """Fold conv bias + eval-mode BN into per-channel scale/shift and reshape
    weights to im2col order (Cout, 9*Cin) in bf16."""
    folded = []
    for layer in raw_layers:
        w, b, bn = layer["w"], layer["b"], layer["bn"]
        cout, cin = w.shape[0], w.shape[1]
        # (Cout, Cin, 3, 3) -> (Cout, 3, 3, Cin) -> (Cout, 9*Cin); row = (ky*3+kx)*Cin+i
        wmat = jnp.transpose(w, (0, 2, 3, 1)).reshape(cout, 9 * cin)
        if bn is not None:
            scale = bn["gamma"] / jnp.sqrt(bn["var"] + BN_EPS)
            shift = bn["beta"] + (b - bn["mean"]) * scale
        else:
            scale = jnp.ones((cout,), jnp.float32)
            shift = b
        folded.append((wmat.astype(COMPUTE_DTYPE),
                       scale.reshape(cout, 1).astype(jnp.float32),
                       shift.reshape(cout, 1).astype(jnp.float32)))
    return tuple(folded)


# ----------------------------------------------------------------------------
# Pure-JAX reference (lax.conv) for a correctness sanity check
# ----------------------------------------------------------------------------
def _reference(x_nchw, raw_layers):
    y = x_nchw.astype(jnp.float32)
    for layer in raw_layers:
        w, b, bn = layer["w"], layer["b"], layer["bn"]
        y = jax.lax.conv_general_dilated(
            y, w, window_strides=(1, 1), padding=((1, 1), (1, 1)),
            dimension_numbers=("NCHW", "OIHW", "NCHW"))
        y = y + b.reshape(1, -1, 1, 1)
        if bn is not None:
            inv = (bn["gamma"] / jnp.sqrt(bn["var"] + BN_EPS)).reshape(1, -1, 1, 1)
            y = (y - bn["mean"].reshape(1, -1, 1, 1)) * inv + bn["beta"].reshape(1, -1, 1, 1)
            y = jnp.maximum(y, 0.0)
        else:
            y = jax.nn.sigmoid(y)
    return y


if __name__ == "__main__":
    N, Cin, Cout, H, W = 2, 4, 2, 16, 16

    key = jax.random.PRNGKey(0)
    k_x, k_p = jax.random.split(key)
    x = jax.random.normal(k_x, (N, Cin, H, W), jnp.float32)

    raw_params = init_params(k_p, Cin, Cout)
    params = fold_params(raw_params)

    out = jax.block_until_ready(output_conv_block(x, params))
    ref = jax.block_until_ready(_reference(x, raw_params))

    assert out.shape == (N, Cout, H, W)
    # bf16 MXU inputs vs f32 reference -> relaxed (still catches layout bugs).
    assert jnp.allclose(out, ref, rtol=5e-2, atol=1e-2), (
        f"max abs err {jnp.max(jnp.abs(out - ref))}")

    print("KERNEL_OK")
</pallas_src>

<mosaic_0001>
module attributes {stable_mosaic.version = 11 : i64} {
  func.func @_fused_block_kernel(%arg0: i32, %arg1: memref<1x4x256xf32, #tpu.memory_space<vmem>>, %arg2: memref<9x1x256xbf16, #tpu.memory_space<vmem>>, %arg3: memref<4x36xbf16, #tpu.memory_space<vmem>>, %arg4: memref<4x1xf32, #tpu.memory_space<vmem>>, %arg5: memref<4x1xf32, #tpu.memory_space<vmem>>, %arg6: memref<4x36xbf16, #tpu.memory_space<vmem>>, %arg7: memref<4x1xf32, #tpu.memory_space<vmem>>, %arg8: memref<4x1xf32, #tpu.memory_space<vmem>>, %arg9: memref<2x36xbf16, #tpu.memory_space<vmem>>, %arg10: memref<2x1xf32, #tpu.memory_space<vmem>>, %arg11: memref<2x1xf32, #tpu.memory_space<vmem>>, %arg12: memref<1x2x256xf32, #tpu.memory_space<vmem>>) attributes {dimension_semantics = [#tpu.dimension_semantics<parallel>], iteration_bounds = array<i64: 2>, scalar_prefetch = 0 : i64, scratch_operands = 0 : i64, tpu.core_type = #tpu.core_type<tc>, window_params = [{transform_indices = @transform_0, window_bounds = array<i64: 1, 4, 256>}, {pipeline_mode = #tpu.pipeline_mode<synchronous>, transform_indices = @transform_1, window_bounds = array<i64: 9, 1, 256>}, {pipeline_mode = #tpu.pipeline_mode<synchronous>, transform_indices = @transform_2, window_bounds = array<i64: 4, 36>}, {pipeline_mode = #tpu.pipeline_mode<synchronous>, transform_indices = @transform_3, window_bounds = array<i64: 4, 1>}, {pipeline_mode = #tpu.pipeline_mode<synchronous>, transform_indices = @transform_4, window_bounds = array<i64: 4, 1>}, {pipeline_mode = #tpu.pipeline_mode<synchronous>, transform_indices = @transform_5, window_bounds = array<i64: 4, 36>}, {pipeline_mode = #tpu.pipeline_mode<synchronous>, transform_indices = @transform_6, window_bounds = array<i64: 4, 1>}, {pipeline_mode = #tpu.pipeline_mode<synchronous>, transform_indices = @transform_7, window_bounds = array<i64: 4, 1>}, {pipeline_mode = #tpu.pipeline_mode<synchronous>, transform_indices = @transform_8, window_bounds = array<i64: 2, 36>}, {pipeline_mode = #tpu.pipeline_mode<synchronous>, transform_indices = @transform_9, window_bounds = array<i64: 2, 1>}, {pipeline_mode = #tpu.pipeline_mode<synchronous>, transform_indices = @transform_10, window_bounds = array<i64: 2, 1>}, {transform_indices = @transform_11, window_bounds = array<i64: 1, 2, 256>}]} {
    %c0 = arith.constant 0 : index
    %c0_0 = arith.constant 0 : index
    %c0_1 = arith.constant 0 : index
    %0 = vector.load %arg1[%c0, %c0_0, %c0_1] : memref<1x4x256xf32, #tpu.memory_space<vmem>>, vector<1x4x256xf32>
    %1 = vector.shape_cast %0 : vector<1x4x256xf32> to vector<4x256xf32>
    %2 = arith.truncf %1 : vector<4x256xf32> to vector<4x256xbf16>
    %3 = vector.extract_strided_slice %2 {offsets = [0, 239], sizes = [4, 17], strides = [1, 1]} : vector<4x256xbf16> to vector<4x17xbf16>
    %4 = vector.extract_strided_slice %2 {offsets = [0, 0], sizes = [4, 239], strides = [1, 1]} : vector<4x256xbf16> to vector<4x239xbf16>
    %5 = tpu.concatenate %3, %4 in 1 : vector<4x17xbf16>, vector<4x239xbf16> -> vector<4x256xbf16>
    %c0_2 = arith.constant 0 : index
    %c0_3 = arith.constant 0 : index
    %c0_4 = arith.constant 0 : index
    %6 = vector.load %arg2[%c0_2, %c0_3, %c0_4] : memref<9x1x256xbf16, #tpu.memory_space<vmem>>, vector<1x1x256xbf16>
    %7 = vector.shape_cast %6 : vector<1x1x256xbf16> to vector<1x256xbf16>
    %8 = vector.broadcast %7 : vector<1x256xbf16> to vector<4x256xbf16>
    %9 = arith.mulf %5, %8 : vector<4x256xbf16>
    %10 = vector.extract_strided_slice %2 {offsets = [0, 240], sizes = [4, 16], strides = [1, 1]} : vector<4x256xbf16> to vector<4x16xbf16>
    %11 = vector.extract_strided_slice %2 {offsets = [0, 0], sizes = [4, 240], strides = [1, 1]} : vector<4x256xbf16> to vector<4x240xbf16>
    %12 = tpu.concatenate %10, %11 in 1 : vector<4x16xbf16>, vector<4x240xbf16> -> vector<4x256xbf16>
    %c1 = arith.constant 1 : index
    %c0_5 = arith.constant 0 : index
    %c0_6 = arith.constant 0 : index
    %13 = vector.load %arg2[%c1, %c0_5, %c0_6] : memref<9x1x256xbf16, #tpu.memory_space<vmem>>, vector<1x1x256xbf16>
    %14 = vector.shape_cast %13 : vector<1x1x256xbf16> to vector<1x256xbf16>
    %15 = vector.broadcast %14 : vector<1x256xbf16> to vector<4x256xbf16>
    %16 = arith.mulf %12, %15 : vector<4x256xbf16>
    %17 = vector.extract_strided_slice %2 {offsets = [0, 241], sizes = [4, 15], strides = [1, 1]} : vector<4x256xbf16> to vector<4x15xbf16>
    %18 = vector.extract_strided_slice %2 {offsets = [0, 0], sizes = [4, 241], strides = [1, 1]} : vector<4x256xbf16> to vector<4x241xbf16>
    %19 = tpu.concatenate %17, %18 in 1 : vector<4x15xbf16>, vector<4x241xbf16> -> vector<4x256xbf16>
    %c2 = arith.constant 2 : index
    %c0_7 = arith.constant 0 : index
    %c0_8 = arith.constant 0 : index
    %20 = vector.load %arg2[%c2, %c0_7, %c0_8] : memref<9x1x256xbf16, #tpu.memory_space<vmem>>, vector<1x1x256xbf16>
    %21 = vector.shape_cast %20 : vector<1x1x256xbf16> to vector<1x256xbf16>
    %22 = vector.broadcast %21 : vector<1x256xbf16> to vector<4x256xbf16>
    %23 = arith.mulf %19, %22 : vector<4x256xbf16>
    %24 = vector.extract_strided_slice %2 {offsets = [0, 255], sizes = [4, 1], strides = [1, 1]} : vector<4x256xbf16> to vector<4x1xbf16>
    %25 = vector.extract_strided_slice %2 {offsets = [0, 0], sizes = [4, 255], strides = [1, 1]} : vector<4x256xbf16> to vector<4x255xbf16>
    %26 = tpu.concatenate %24, %25 in 1 : vector<4x1xbf16>, vector<4x255xbf16> -> vector<4x256xbf16>
    %c3 = arith.constant 3 : index
    %c0_9 = arith.constant 0 : index
    %c0_10 = arith.constant 0 : index
    %27 = vector.load %arg2[%c3, %c0_9, %c0_10] : memref<9x1x256xbf16, #tpu.memory_space<vmem>>, vector<1x1x256xbf16>
    %28 = vector.shape_cast %27 : vector<1x1x256xbf16> to vector<1x256xbf16>
    %29 = vector.broadcast %28 : vector<1x256xbf16> to vector<4x256xbf16>
    %30 = arith.mulf %26, %29 : vector<4x256xbf16>
    %31 = vector.extract_strided_slice %2 {offsets = [0, 1], sizes = [4, 255], strides = [1, 1]} : vector<4x256xbf16> to vector<4x255xbf16>
    %32 = vector.extract_strided_slice %2 {offsets = [0, 0], sizes = [4, 1], strides = [1, 1]} : vector<4x256xbf16> to vector<4x1xbf16>
    %33 = tpu.concatenate %31, %32 in 1 : vector<4x255xbf16>, vector<4x1xbf16> -> vector<4x256xbf16>
    %c5 = arith.constant 5 : index
    %c0_11 = arith.constant 0 : index
    %c0_12 = arith.constant 0 : index
    %34 = vector.load %arg2[%c5, %c0_11, %c0_12] : memref<9x1x256xbf16, #tpu.memory_space<vmem>>, vector<1x1x256xbf16>
    %35 = vector.shape_cast %34 : vector<1x1x256xbf16> to vector<1x256xbf16>
    %36 = vector.broadcast %35 : vector<1x256xbf16> to vector<4x256xbf16>
    %37 = arith.mulf %33, %36 : vector<4x256xbf16>
    %38 = vector.extract_strided_slice %2 {offsets = [0, 15], sizes = [4, 241], strides = [1, 1]} : vector<4x256xbf16> to vector<4x241xbf16>
    %39 = vector.extract_strided_slice %2 {offsets = [0, 0], sizes = [4, 15], strides = [1, 1]} : vector<4x256xbf16> to vector<4x15xbf16>
    %40 = tpu.concatenate %38, %39 in 1 : vector<4x241xbf16>, vector<4x15xbf16> -> vector<4x256xbf16>
    %c6 = arith.constant 6 : index
    %c0_13 = arith.constant 0 : index
    %c0_14 = arith.constant 0 : index
    %41 = vector.load %arg2[%c6, %c0_13, %c0_14] : memref<9x1x256xbf16, #tpu.memory_space<vmem>>, vector<1x1x256xbf16>
    %42 = vector.shape_cast %41 : vector<1x1x256xbf16> to vector<1x256xbf16>
    %43 = vector.broadcast %42 : vector<1x256xbf16> to vector<4x256xbf16>
    %44 = arith.mulf %40, %43 : vector<4x256xbf16>
    %45 = vector.extract_strided_slice %2 {offsets = [0, 16], sizes = [4, 240], strides = [1, 1]} : vector<4x256xbf16> to vector<4x240xbf16>
    %46 = vector.extract_strided_slice %2 {offsets = [0, 0], sizes = [4, 16], strides = [1, 1]} : vector<4x256xbf16> to vector<4x16xbf16>
    %47 = tpu.concatenate %45, %46 in 1 : vector<4x240xbf16>, vector<4x16xbf16> -> vector<4x256xbf16>
    %c7 = arith.constant 7 : index
    %c0_15 = arith.constant 0 : index
    %c0_16 = arith.constant 0 : index
    %48 = vector.load %arg2[%c7, %c0_15, %c0_16] : memref<9x1x256xbf16, #tpu.memory_space<vmem>>, vector<1x1x256xbf16>
    %49 = vector.shape_cast %48 : vector<1x1x256xbf16> to vector<1x256xbf16>
    %50 = vector.broadcast %49 : vector<1x256xbf16> to vector<4x256xbf16>
    %51 = arith.mulf %47, %50 : vector<4x256xbf16>
    %52 = vector.extract_strided_slice %2 {offsets = [0, 17], sizes = [4, 239], strides = [1, 1]} : vector<4x256xbf16> to vector<4x239xbf16>
    %53 = vector.extract_strided_slice %2 {offsets = [0, 0], sizes = [4, 17], strides = [1, 1]} : vector<4x256xbf16> to vector<4x17xbf16>
    %54 = tpu.concatenate %52, %53 in 1 : vector<4x239xbf16>, vector<4x17xbf16> -> vector<4x256xbf16>
    %c8 = arith.constant 8 : index
    %c0_17 = arith.constant 0 : index
    %c0_18 = arith.constant 0 : index
    %55 = vector.load %arg2[%c8, %c0_17, %c0_18] : memref<9x1x256xbf16, #tpu.memory_space<vmem>>, vector<1x1x256xbf16>
    %56 = vector.shape_cast %55 : vector<1x1x256xbf16> to vector<1x256xbf16>
    %57 = vector.broadcast %56 : vector<1x256xbf16> to vector<4x256xbf16>
    %58 = arith.mulf %54, %57 : vector<4x256xbf16>
    %59 = tpu.concatenate %9, %16, %23, %30, %2, %37, %44, %51, %58 in 0 : vector<4x256xbf16>, vector<4x256xbf16>, vector<4x256xbf16>, vector<4x256xbf16>, vector<4x256xbf16>, vector<4x256xbf16>, vector<4x256xbf16>, vector<4x256xbf16>, vector<4x256xbf16> -> vector<36x256xbf16>
    %c0_19 = arith.constant 0 : index
    %c0_20 = arith.constant 0 : index
    %60 = vector.load %arg3[%c0_19, %c0_20] : memref<4x36xbf16, #tpu.memory_space<vmem>>, vector<4x36xbf16>
    %cst = arith.constant dense<0.000000e+00> : vector<4x256xf32>
    %61 = tpu.matmul %60, %59, %cst {dimension_numbers = #tpu.dot_dimension_numbers<[1], [0], [0], [1], [0, 0, 1, 1], [], []>} : vector<4x36xbf16>, vector<36x256xbf16>, vector<4x256xf32> -> vector<4x256xf32>
    %c0_21 = arith.constant 0 : index
    %c0_22 = arith.constant 0 : index
    %62 = vector.load %arg4[%c0_21, %c0_22] : memref<4x1xf32, #tpu.memory_space<vmem>>, vector<4x1xf32>
    %63 = vector.broadcast %62 : vector<4x1xf32> to vector<4x256xf32>
    %64 = arith.mulf %61, %63 : vector<4x256xf32>
    %c0_23 = arith.constant 0 : index
    %c0_24 = arith.constant 0 : index
    %65 = vector.load %arg5[%c0_23, %c0_24] : memref<4x1xf32, #tpu.memory_space<vmem>>, vector<4x1xf32>
    %66 = vector.broadcast %65 : vector<4x1xf32> to vector<4x256xf32>
    %67 = arith.addf %64, %66 : vector<4x256xf32>
    %cst_25 = arith.constant 0.000000e+00 : f32
    %68 = vector.broadcast %cst_25 : f32 to vector<4x256xf32>
    %69 = arith.maximumf %67, %68 : vector<4x256xf32>
    %70 = arith.truncf %69 : vector<4x256xf32> to vector<4x256xbf16>
    %71 = vector.extract_strided_slice %70 {offsets = [0, 239], sizes = [4, 17], strides = [1, 1]} : vector<4x256xbf16> to vector<4x17xbf16>
    %72 = vector.extract_strided_slice %70 {offsets = [0, 0], sizes = [4, 239], strides = [1, 1]} : vector<4x256xbf16> to vector<4x239xbf16>
    %73 = tpu.concatenate %71, %72 in 1 : vector<4x17xbf16>, vector<4x239xbf16> -> vector<4x256xbf16>
    %c0_26 = arith.constant 0 : index
    %c0_27 = arith.constant 0 : index
    %c0_28 = arith.constant 0 : index
    %74 = vector.load %arg2[%c0_26, %c0_27, %c0_28] : memref<9x1x256xbf16, #tpu.memory_space<vmem>>, vector<1x1x256xbf16>
    %75 = vector.shape_cast %74 : vector<1x1x256xbf16> to vector<1x256xbf16>
    %76 = vector.broadcast %75 : vector<1x256xbf16> to vector<4x256xbf16>
    %77 = arith.mulf %73, %76 : vector<4x256xbf16>
    %78 = vector.extract_strided_slice %70 {offsets = [0, 240], sizes = [4, 16], strides = [1, 1]} : vector<4x256xbf16> to vector<4x16xbf16>
    %79 = vector.extract_strided_slice %70 {offsets = [0, 0], sizes = [4, 240], strides = [1, 1]} : vector<4x256xbf16> to vector<4x240xbf16>
    %80 = tpu.concatenate %78, %79 in 1 : vector<4x16xbf16>, vector<4x240xbf16> -> vector<4x256xbf16>
    %c1_29 = arith.constant 1 : index
    %c0_30 = arith.constant 0 : index
    %c0_31 = arith.constant 0 : index
    %81 = vector.load %arg2[%c1_29, %c0_30, %c0_31] : memref<9x1x256xbf16, #tpu.memory_space<vmem>>, vector<1x1x256xbf16>
    %82 = vector.shape_cast %81 : vector<1x1x256xbf16> to vector<1x256xbf16>
    %83 = vector.broadcast %82 : vector<1x256xbf16> to vector<4x256xbf16>
    %84 = arith.mulf %80, %83 : vector<4x256xbf16>
    %85 = vector.extract_strided_slice %70 {offsets = [0, 241], sizes = [4, 15], strides = [1, 1]} : vector<4x256xbf16> to vector<4x15xbf16>
    %86 = vector.extract_strided_slice %70 {offsets = [0, 0], sizes = [4, 241], strides = [1, 1]} : vector<4x256xbf16> to vector<4x241xbf16>
    %87 = tpu.concatenate %85, %86 in 1 : vector<4x15xbf16>, vector<4x241xbf16> -> vector<4x256xbf16>
    %c2_32 = arith.constant 2 : index
    %c0_33 = arith.constant 0 : index
    %c0_34 = arith.constant 0 : index
    %88 = vector.load %arg2[%c2_32, %c0_33, %c0_34] : memref<9x1x256xbf16, #tpu.memory_space<vmem>>, vector<1x1x256xbf16>
    %89 = vector.shape_cast %88 : vector<1x1x256xbf16> to vector<1x256xbf16>
    %90 = vector.broadcast %89 : vector<1x256xbf16> to vector<4x256xbf16>
    %91 = arith.mulf %87, %90 : vector<4x256xbf16>
    %92 = vector.extract_strided_slice %70 {offsets = [0, 255], sizes = [4, 1], strides = [1, 1]} : vector<4x256xbf16> to vector<4x1xbf16>
    %93 = vector.extract_strided_slice %70 {offsets = [0, 0], sizes = [4, 255], strides = [1, 1]} : vector<4x256xbf16> to vector<4x255xbf16>
    %94 = tpu.concatenate %92, %93 in 1 : vector<4x1xbf16>, vector<4x255xbf16> -> vector<4x256xbf16>
    %c3_35 = arith.constant 3 : index
    %c0_36 = arith.constant 0 : index
    %c0_37 = arith.constant 0 : index
    %95 = vector.load %arg2[%c3_35, %c0_36, %c0_37] : memref<9x1x256xbf16, #tpu.memory_space<vmem>>, vector<1x1x256xbf16>
    %96 = vector.shape_cast %95 : vector<1x1x256xbf16> to vector<1x256xbf16>
    %97 = vector.broadcast %96 : vector<1x256xbf16> to vector<4x256xbf16>
    %98 = arith.mulf %94, %97 : vector<4x256xbf16>
    %99 = vector.extract_strided_slice %70 {offsets = [0, 1], sizes = [4, 255], strides = [1, 1]} : vector<4x256xbf16> to vector<4x255xbf16>
    %100 = vector.extract_strided_slice %70 {offsets = [0, 0], sizes = [4, 1], strides = [1, 1]} : vector<4x256xbf16> to vector<4x1xbf16>
    %101 = tpu.concatenate %99, %100 in 1 : vector<4x255xbf16>, vector<4x1xbf16> -> vector<4x256xbf16>
    %c5_38 = arith.constant 5 : index
    %c0_39 = arith.constant 0 : index
    %c0_40 = arith.constant 0 : index
    %102 = vector.load %arg2[%c5_38, %c0_39, %c0_40] : memref<9x1x256xbf16, #tpu.memory_space<vmem>>, vector<1x1x256xbf16>
    %103 = vector.shape_cast %102 : vector<1x1x256xbf16> to vector<1x256xbf16>
    %104 = vector.broadcast %103 : vector<1x256xbf16> to vector<4x256xbf16>
    %105 = arith.mulf %101, %104 : vector<4x256xbf16>
    %106 = vector.extract_strided_slice %70 {offsets = [0, 15], sizes = [4, 241], strides = [1, 1]} : vector<4x256xbf16> to vector<4x241xbf16>
    %107 = vector.extract_strided_slice %70 {offsets = [0, 0], sizes = [4, 15], strides = [1, 1]} : vector<4x256xbf16> to vector<4x15xbf16>
    %108 = tpu.concatenate %106, %107 in 1 : vector<4x241xbf16>, vector<4x15xbf16> -> vector<4x256xbf16>
    %c6_41 = arith.constant 6 : index
    %c0_42 = arith.constant 0 : index
    %c0_43 = arith.constant 0 : index
    %109 = vector.load %arg2[%c6_41, %c0_42, %c0_43] : memref<9x1x256xbf16, #tpu.memory_space<vmem>>, vector<1x1x256xbf16>
    %110 = vector.shape_cast %109 : vector<1x1x256xbf16> to vector<1x256xbf16>
    %111 = vector.broadcast %110 : vector<1x256xbf16> to vector<4x256xbf16>
    %112 = arith.mulf %108, %111 : vector<4x256xbf16>
    %113 = vector.extract_strided_slice %70 {offsets = [0, 16], sizes = [4, 240], strides = [1, 1]} : vector<4x256xbf16> to vector<4x240xbf16>
    %114 = vector.extract_strided_slice %70 {offsets = [0, 0], sizes = [4, 16], strides = [1, 1]} : vector<4x256xbf16> to vector<4x16xbf16>
    %115 = tpu.concatenate %113, %114 in 1 : vector<4x240xbf16>, vector<4x16xbf16> -> vector<4x256xbf16>
    %c7_44 = arith.constant 7 : index
    %c0_45 = arith.constant 0 : index
    %c0_46 = arith.constant 0 : index
    %116 = vector.load %arg2[%c7_44, %c0_45, %c0_46] : memref<9x1x256xbf16, #tpu.memory_space<vmem>>, vector<1x1x256xbf16>
    %117 = vector.shape_cast %116 : vector<1x1x256xbf16> to vector<1x256xbf16>
    %118 = vector.broadcast %117 : vector<1x256xbf16> to vector<4x256xbf16>
    %119 = arith.mulf %115, %118 : vector<4x256xbf16>
    %120 = vector.extract_strided_slice %70 {offsets = [0, 17], sizes = [4, 239], strides = [1, 1]} : vector<4x256xbf16> to vector<4x239xbf16>
    %121 = vector.extract_strided_slice %70 {offsets = [0, 0], sizes = [4, 17], strides = [1, 1]} : vector<4x256xbf16> to vector<4x17xbf16>
    %122 = tpu.concatenate %120, %121 in 1 : vector<4x239xbf16>, vector<4x17xbf16> -> vector<4x256xbf16>
    %c8_47 = arith.constant 8 : index
    %c0_48 = arith.constant 0 : index
    %c0_49 = arith.constant 0 : index
    %123 = vector.load %arg2[%c8_47, %c0_48, %c0_49] : memref<9x1x256xbf16, #tpu.memory_space<vmem>>, vector<1x1x256xbf16>
    %124 = vector.shape_cast %123 : vector<1x1x256xbf16> to vector<1x256xbf16>
    %125 = vector.broadcast %124 : vector<1x256xbf16> to vector<4x256xbf16>
    %126 = arith.mulf %122, %125 : vector<4x256xbf16>
    %127 = tpu.concatenate %77, %84, %91, %98, %70, %105, %112, %119, %126 in 0 : vector<4x256xbf16>, vector<4x256xbf16>, vector<4x256xbf16>, vector<4x256xbf16>, vector<4x256xbf16>, vector<4x256xbf16>, vector<4x256xbf16>, vector<4x256xbf16>, vector<4x256xbf16> -> vector<36x256xbf16>
    %c0_50 = arith.constant 0 : index
    %c0_51 = arith.constant 0 : index
    %128 = vector.load %arg6[%c0_50, %c0_51] : memref<4x36xbf16, #tpu.memory_space<vmem>>, vector<4x36xbf16>
    %cst_52 = arith.constant dense<0.000000e+00> : vector<4x256xf32>
    %129 = tpu.matmul %128, %127, %cst_52 {dimension_numbers = #tpu.dot_dimension_numbers<[1], [0], [0], [1], [0, 0, 1, 1], [], []>} : vector<4x36xbf16>, vector<36x256xbf16>, vector<4x256xf32> -> vector<4x256xf32>
    %c0_53 = arith.constant 0 : index
    %c0_54 = arith.constant 0 : index
    %130 = vector.load %arg7[%c0_53, %c0_54] : memref<4x1xf32, #tpu.memory_space<vmem>>, vector<4x1xf32>
    %131 = vector.broadcast %130 : vector<4x1xf32> to vector<4x256xf32>
    %132 = arith.mulf %129, %131 : vector<4x256xf32>
    %c0_55 = arith.constant 0 : index
    %c0_56 = arith.constant 0 : index
    %133 = vector.load %arg8[%c0_55, %c0_56] : memref<4x1xf32, #tpu.memory_space<vmem>>, vector<4x1xf32>
    %134 = vector.broadcast %133 : vector<4x1xf32> to vector<4x256xf32>
    %135 = arith.addf %132, %134 : vector<4x256xf32>
    %cst_57 = arith.constant 0.000000e+00 : f32
    %136 = vector.broadcast %cst_57 : f32 to vector<4x256xf32>
    %137 = arith.maximumf %135, %136 : vector<4x256xf32>
    %138 = arith.truncf %137 : vector<4x256xf32> to vector<4x256xbf16>
    %139 = vector.extract_strided_slice %138 {offsets = [0, 239], sizes = [4, 17], strides = [1, 1]} : vector<4x256xbf16> to vector<4x17xbf16>
    %140 = vector.extract_strided_slice %138 {offsets = [0, 0], sizes = [4, 239], strides = [1, 1]} : vector<4x256xbf16> to vector<4x239xbf16>
    %141 = tpu.concatenate %139, %140 in 1 : vector<4x17xbf16>, vector<4x239xbf16> -> vector<4x256xbf16>
    %c0_58 = arith.constant 0 : index
    %c0_59 = arith.constant 0 : index
    %c0_60 = arith.constant 0 : index
    %142 = vector.load %arg2[%c0_58, %c0_59, %c0_60] : memref<9x1x256xbf16, #tpu.memory_space<vmem>>, vector<1x1x256xbf16>
    %143 = vector.shape_cast %142 : vector<1x1x256xbf16> to vector<1x256xbf16>
    %144 = vector.broadcast %143 : vector<1x256xbf16> to vector<4x256xbf16>
    %145 = arith.mulf %141, %144 : vector<4x256xbf16>
    %146 = vector.extract_strided_slice %138 {offsets = [0, 240], sizes = [4, 16], strides = [1, 1]} : vector<4x256xbf16> to vector<4x16xbf16>
    %147 = vector.extract_strided_slice %138 {offsets = [0, 0], sizes = [4, 240], strides = [1, 1]} : vector<4x256xbf16> to vector<4x240xbf16>
    %148 = tpu.concatenate %146, %147 in 1 : vector<4x16xbf16>, vector<4x240xbf16> -> vector<4x256xbf16>
    %c1_61 = arith.constant 1 : index
    %c0_62 = arith.constant 0 : index
    %c0_63 = arith.constant 0 : index
    %149 = vector.load %arg2[%c1_61, %c0_62, %c0_63] : memref<9x1x256xbf16, #tpu.memory_space<vmem>>, vector<1x1x256xbf16>
    %150 = vector.shape_cast %149 : vector<1x1x256xbf16> to vector<1x256xbf16>
    %151 = vector.broadcast %150 : vector<1x256xbf16> to vector<4x256xbf16>
    %152 = arith.mulf %148, %151 : vector<4x256xbf16>
    %153 = vector.extract_strided_slice %138 {offsets = [0, 241], sizes = [4, 15], strides = [1, 1]} : vector<4x256xbf16> to vector<4x15xbf16>
    %154 = vector.extract_strided_slice %138 {offsets = [0, 0], sizes = [4, 241], strides = [1, 1]} : vector<4x256xbf16> to vector<4x241xbf16>
    %155 = tpu.concatenate %153, %154 in 1 : vector<4x15xbf16>, vector<4x241xbf16> -> vector<4x256xbf16>
    %c2_64 = arith.constant 2 : index
    %c0_65 = arith.constant 0 : index
    %c0_66 = arith.constant 0 : index
    %156 = vector.load %arg2[%c2_64, %c0_65, %c0_66] : memref<9x1x256xbf16, #tpu.memory_space<vmem>>, vector<1x1x256xbf16>
    %157 = vector.shape_cast %156 : vector<1x1x256xbf16> to vector<1x256xbf16>
    %158 = vector.broadcast %157 : vector<1x256xbf16> to vector<4x256xbf16>
    %159 = arith.mulf %155, %158 : vector<4x256xbf16>
    %160 = vector.extract_strided_slice %138 {offsets = [0, 255], sizes = [4, 1], strides = [1, 1]} : vector<4x256xbf16> to vector<4x1xbf16>
    %161 = vector.extract_strided_slice %138 {offsets = [0, 0], sizes = [4, 255], strides = [1, 1]} : vector<4x256xbf16> to vector<4x255xbf16>
    %162 = tpu.concatenate %160, %161 in 1 : vector<4x1xbf16>, vector<4x255xbf16> -> vector<4x256xbf16>
    %c3_67 = arith.constant 3 : index
    %c0_68 = arith.constant 0 : index
    %c0_69 = arith.constant 0 : index
    %163 = vector.load %arg2[%c3_67, %c0_68, %c0_69] : memref<9x1x256xbf16, #tpu.memory_space<vmem>>, vector<1x1x256xbf16>
    %164 = vector.shape_cast %163 : vector<1x1x256xbf16> to vector<1x256xbf16>
    %165 = vector.broadcast %164 : vector<1x256xbf16> to vector<4x256xbf16>
    %166 = arith.mulf %162, %165 : vector<4x256xbf16>
    %167 = vector.extract_strided_slice %138 {offsets = [0, 1], sizes = [4, 255], strides = [1, 1]} : vector<4x256xbf16> to vector<4x255xbf16>
    %168 = vector.extract_strided_slice %138 {offsets = [0, 0], sizes = [4, 1], strides = [1, 1]} : vector<4x256xbf16> to vector<4x1xbf16>
    %169 = tpu.concatenate %167, %168 in 1 : vector<4x255xbf16>, vector<4x1xbf16> -> vector<4x256xbf16>
    %c5_70 = arith.constant 5 : index
    %c0_71 = arith.constant 0 : index
    %c0_72 = arith.constant 0 : index
    %170 = vector.load %arg2[%c5_70, %c0_71, %c0_72] : memref<9x1x256xbf16, #tpu.memory_space<vmem>>, vector<1x1x256xbf16>
    %171 = vector.shape_cast %170 : vector<1x1x256xbf16> to vector<1x256xbf16>
    %172 = vector.broadcast %171 : vector<1x256xbf16> to vector<4x256xbf16>
    %173 = arith.mulf %169, %172 : vector<4x256xbf16>
    %174 = vector.extract_strided_slice %138 {offsets = [0, 15], sizes = [4, 241], strides = [1, 1]} : vector<4x256xbf16> to vector<4x241xbf16>
    %175 = vector.extract_strided_slice %138 {offsets = [0, 0], sizes = [4, 15], strides = [1, 1]} : vector<4x256xbf16> to vector<4x15xbf16>
    %176 = tpu.concatenate %174, %175 in 1 : vector<4x241xbf16>, vector<4x15xbf16> -> vector<4x256xbf16>
    %c6_73 = arith.constant 6 : index
    %c0_74 = arith.constant 0 : index
    %c0_75 = arith.constant 0 : index
    %177 = vector.load %arg2[%c6_73, %c0_74, %c0_75] : memref<9x1x256xbf16, #tpu.memory_space<vmem>>, vector<1x1x256xbf16>
    %178 = vector.shape_cast %177 : vector<1x1x256xbf16> to vector<1x256xbf16>
    %179 = vector.broadcast %178 : vector<1x256xbf16> to vector<4x256xbf16>
    %180 = arith.mulf %176, %179 : vector<4x256xbf16>
    %181 = vector.extract_strided_slice %138 {offsets = [0, 16], sizes = [4, 240], strides = [1, 1]} : vector<4x256xbf16> to vector<4x240xbf16>
    %182 = vector.extract_strided_slice %138 {offsets = [0, 0], sizes = [4, 16], strides = [1, 1]} : vector<4x256xbf16> to vector<4x16xbf16>
    %183 = tpu.concatenate %181, %182 in 1 : vector<4x240xbf16>, vector<4x16xbf16> -> vector<4x256xbf16>
    %c7_76 = arith.constant 7 : index
    %c0_77 = arith.constant 0 : index
    %c0_78 = arith.constant 0 : index
    %184 = vector.load %arg2[%c7_76, %c0_77, %c0_78] : memref<9x1x256xbf16, #tpu.memory_space<vmem>>, vector<1x1x256xbf16>
    %185 = vector.shape_cast %184 : vector<1x1x256xbf16> to vector<1x256xbf16>
    %186 = vector.broadcast %185 : vector<1x256xbf16> to vector<4x256xbf16>
    %187 = arith.mulf %183, %186 : vector<4x256xbf16>
    %188 = vector.extract_strided_slice %138 {offsets = [0, 17], sizes = [4, 239], strides = [1, 1]} : vector<4x256xbf16> to vector<4x239xbf16>
    %189 = vector.extract_strided_slice %138 {offsets = [0, 0], sizes = [4, 17], strides = [1, 1]} : vector<4x256xbf16> to vector<4x17xbf16>
    %190 = tpu.concatenate %188, %189 in 1 : vector<4x239xbf16>, vector<4x17xbf16> -> vector<4x256xbf16>
    %c8_79 = arith.constant 8 : index
    %c0_80 = arith.constant 0 : index
    %c0_81 = arith.constant 0 : index
    %191 = vector.load %arg2[%c8_79, %c0_80, %c0_81] : memref<9x1x256xbf16, #tpu.memory_space<vmem>>, vector<1x1x256xbf16>
    %192 = vector.shape_cast %191 : vector<1x1x256xbf16> to vector<1x256xbf16>
    %193 = vector.broadcast %192 : vector<1x256xbf16> to vector<4x256xbf16>
    %194 = arith.mulf %190, %193 : vector<4x256xbf16>
    %195 = tpu.concatenate %145, %152, %159, %166, %138, %173, %180, %187, %194 in 0 : vector<4x256xbf16>, vector<4x256xbf16>, vector<4x256xbf16>, vector<4x256xbf16>, vector<4x256xbf16>, vector<4x256xbf16>, vector<4x256xbf16>, vector<4x256xbf16>, vector<4x256xbf16> -> vector<36x256xbf16>
    %c0_82 = arith.constant 0 : index
    %c0_83 = arith.constant 0 : index
    %196 = vector.load %arg9[%c0_82, %c0_83] : memref<2x36xbf16, #tpu.memory_space<vmem>>, vector<2x36xbf16>
    %cst_84 = arith.constant dense<0.000000e+00> : vector<2x256xf32>
    %197 = tpu.matmul %196, %195, %cst_84 {dimension_numbers = #tpu.dot_dimension_numbers<[1], [0], [0], [1], [0, 0, 1, 1], [], []>} : vector<2x36xbf16>, vector<36x256xbf16>, vector<2x256xf32> -> vector<2x256xf32>
    %c0_85 = arith.constant 0 : index
    %c0_86 = arith.constant 0 : index
    %198 = vector.load %arg10[%c0_85, %c0_86] : memref<2x1xf32, #tpu.memory_space<vmem>>, vector<2x1xf32>
    %199 = vector.broadcast %198 : vector<2x1xf32> to vector<2x256xf32>
    %200 = arith.mulf %197, %199 : vector<2x256xf32>
    %c0_87 = arith.constant 0 : index
    %c0_88 = arith.constant 0 : index
    %201 = vector.load %arg11[%c0_87, %c0_88] : memref<2x1xf32, #tpu.memory_space<vmem>>, vector<2x1xf32>
    %202 = vector.broadcast %201 : vector<2x1xf32> to vector<2x256xf32>
    %203 = arith.addf %200, %202 : vector<2x256xf32>
    %204 = arith.negf %203 : vector<2x256xf32>
    %205 = math.exp %204 : vector<2x256xf32>
    %cst_89 = arith.constant 1.000000e+00 : f32
    %206 = vector.broadcast %cst_89 : f32 to vector<2x256xf32>
    %207 = arith.addf %206, %205 : vector<2x256xf32>
    %208 = arith.divf %206, %207 : vector<2x256xf32>
    %c0_90 = arith.constant 0 : index
    %c0_91 = arith.constant 0 : index
    %c0_92 = arith.constant 0 : index
    %209 = vector.load %arg12[%c0_90, %c0_91, %c0_92] : memref<1x2x256xf32, #tpu.memory_space<vmem>>, vector<1x2x256xf32>
    %210 = vector.shape_cast %209 : vector<1x2x256xf32> to vector<2x256xf32>
    %211 = vector.shape_cast %208 : vector<2x256xf32> to vector<1x2x256xf32>
    tpu.vector_store %arg12[%c0_90, %c0_91, %c0_92], %211 {strides = array<i32>} : memref<1x2x256xf32, #tpu.memory_space<vmem>>, vector<1x2x256xf32>,
    return
  }
  func.func @transform_0(%arg0: i32) -> (i32, i32, i32) {
    %c0_i32 = arith.constant 0 : i32
    %c0_i32_0 = arith.constant 0 : i32
    %c0_i32_1 = arith.constant 0 : i32
    return %arg0, %c0_i32, %c0_i32_0 : i32, i32, i32
  }
  func.func @transform_1(%arg0: i32) -> (i32, i32, i32) {
    %c0_i32 = arith.constant 0 : i32
    %c0_i32_0 = arith.constant 0 : i32
    %c0_i32_1 = arith.constant 0 : i32
    %c0_i32_2 = arith.constant 0 : i32
    return %c0_i32, %c0_i32_0, %c0_i32_1 : i32, i32, i32
  }
  func.func @transform_2(%arg0: i32) -> (i32, i32) {
    %c0_i32 = arith.constant 0 : i32
    %c0_i32_0 = arith.constant 0 : i32
    %c0_i32_1 = arith.constant 0 : i32
    return %c0_i32, %c0_i32_0 : i32, i32
  }
  func.func @transform_3(%arg0: i32) -> (i32, i32) {
    %c0_i32 = arith.constant 0 : i32
    %c0_i32_0 = arith.constant 0 : i32
    %c0_i32_1 = arith.constant 0 : i32
    return %c0_i32, %c0_i32_0 : i32, i32
  }
  func.func @transform_4(%arg0: i32) -> (i32, i32) {
    %c0_i32 = arith.constant 0 : i32
    %c0_i32_0 = arith.constant 0 : i32
    %c0_i32_1 = arith.constant 0 : i32
    return %c0_i32, %c0_i32_0 : i32, i32
  }
  func.func @transform_5(%arg0: i32) -> (i32, i32) {
    %c0_i32 = arith.constant 0 : i32
    %c0_i32_0 = arith.constant 0 : i32
    %c0_i32_1 = arith.constant 0 : i32
    return %c0_i32, %c0_i32_0 : i32, i32
  }
  func.func @transform_6(%arg0: i32) -> (i32, i32) {
    %c0_i32 = arith.constant 0 : i32
    %c0_i32_0 = arith.constant 0 : i32
    %c0_i32_1 = arith.constant 0 : i32
    return %c0_i32, %c0_i32_0 : i32, i32
  }
  func.func @transform_7(%arg0: i32) -> (i32, i32) {
    %c0_i32 = arith.constant 0 : i32
    %c0_i32_0 = arith.constant 0 : i32
    %c0_i32_1 = arith.constant 0 : i32
    return %c0_i32, %c0_i32_0 : i32, i32
  }
  func.func @transform_8(%arg0: i32) -> (i32, i32) {
    %c0_i32 = arith.constant 0 : i32
    %c0_i32_0 = arith.constant 0 : i32
    %c0_i32_1 = arith.constant 0 : i32
    return %c0_i32, %c0_i32_0 : i32, i32
  }
  func.func @transform_9(%arg0: i32) -> (i32, i32) {
    %c0_i32 = arith.constant 0 : i32
    %c0_i32_0 = arith.constant 0 : i32
    %c0_i32_1 = arith.constant 0 : i32
    return %c0_i32, %c0_i32_0 : i32, i32
  }
  func.func @transform_10(%arg0: i32) -> (i32, i32) {
    %c0_i32 = arith.constant 0 : i32
    %c0_i32_0 = arith.constant 0 : i32
    %c0_i32_1 = arith.constant 0 : i32
    return %c0_i32, %c0_i32_0 : i32, i32
  }
  func.func @transform_11(%arg0: i32) -> (i32, i32, i32) {
    %c0_i32 = arith.constant 0 : i32
    %c0_i32_0 = arith.constant 0 : i32
    %c0_i32_1 = arith.constant 0 : i32
    return %arg0, %c0_i32, %c0_i32_0 : i32, i32, i32
  }
}

</mosaic_0001>

<bundles_post_ra>
// kernel: tpu_custom_call.1
= control target key start
LH: loop header
LB: loop body
LE: loop exit
PB: predicated region body
PF: predicated region fallthrough
CT: control target
= control target key end

     0   :  { %s2204_s0 = inlined_call_operand.vmem [shape: f32[2,4,256], index: 0, kind: input, shape index: {}]   ;;  %s2205_s1 = inlined_call_operand.vmem [shape: bf16[9,1,256], index: 1, kind: input, shape index: {}]   ;;  %s2206_s2 = inlined_call_operand.vmem [shape: bf16[4,36], index: 2, kind: input, shape index: {}]   ;;  %s2207_s3 = inlined_call_operand.vmem [shape: f32[4,1], index: 3, kind: input, shape index: {}]   ;;  %s2208_s4 = inlined_call_operand.vmem [shape: f32[4,1], index: 4, kind: input, shape index: {}]   ;;  %s2209_s5 = inlined_call_operand.vmem [shape: bf16[4,36], index: 5, kind: input, shape index: {}]   ;;  %s2210_s6 = inlined_call_operand.vmem [shape: f32[4,1], index: 6, kind: input, shape index: {}]   ;;  %s2211_s7 = inlined_call_operand.vmem [shape: f32[4,1], index: 7, kind: input, shape index: {}]   ;;  %s2212_s8 = inlined_call_operand.vmem [shape: bf16[2,36], index: 8, kind: input, shape index: {}]   ;;  %s2213_s9 = inlined_call_operand.vmem [shape: f32[2,1], index: 9, kind: input, shape index: {}]   ;;  %s2214_s10 = inlined_call_operand.vmem [shape: f32[2,1], index: 10, kind: input, shape index: {}]   ;;  %s2215_s11 = inlined_call_operand.hbm [shape: f32[2,2,256], index: 11, kind: output, shape index: {}]  }
   0x1   :  { %2232 = sst [smem:[#allocation5_spill]] %s2204_s0 }
   0x2   :  { %16 = vsyncpa [#allocation3], 0 }
   0x3   :  { %18 = vsyncpa [#allocation3 + $0x1], 0  ;;  %s1725_s17 = smov 0   ;;  %s1727_s18 = smov 0  }
   0x4   :  { %s1729_s19 = smov 0   ;;  %s1731_s20 = smov 0  }
   0x5 LB: > { %s1746_s21 = sadd.s32 4294967295, %s1652_s20   ;;  %s1492_s22 = sadd.s32 4294967294, %s1652_s20   ;;  %s1652_s20 = sphi %s1731_s20, %s2247_s20   ;;  %s1648_s19 = sphi %s1729_s19, %s2246_s19   ;;  %s1644_s18 = sphi %s1727_s18, %s2245_s18   ;;  %s1640_s17 = sphi %s1725_s17, %s2244_s17  }
   0x6   : > { %s1750_s23 = sadd.s32 1, %s1652_s20   ;;  %s267_s24 = sadd.s32 1, %s1648_s19 }
   0x7   : > { %s264_s25 = ssub.s32 %s1652_s20, %s1750_s23  ;;  %p277_p0 = scmp.ne.s32.totalorder %s1648_s19, %s1644_s18 }
   0x8   : > { %p265_p1 = scmp.eq.s32.totalorder %s264_s25, 0  ;;  %p278_p2 = scmp.eq.s32.totalorder %s1746_s21, 1 }
   0x9   : > { %p283_p3 = scmp.ne.s32.totalorder %s1644_s18, %s1640_s17  ;;  %p284_p4 = scmp.eq.s32.totalorder %s1492_s22, 1 }
   0xa   : > { %s1761_s26 = scalar_select %p265_p1, %s1648_s19, %s267_s24  }
   0xb   : > { %p1763_p5 = por %p278_p2, %p277_p0  ;;  %p1767_p6 = por %p284_p4, %p283_p3 }
   0xc   : > { %p1495_p7 = scmp.ge.s32.totalorder %s1652_s20, 1  ;;  %p340_p8 = scmp.lt.s32.totalorder %s1652_s20, 3 }
   0xe   : > { %p341_p9 = pnand %p1495_p7, %p340_p8 }
   0xf   : > { %p380_p10 = scmp.lt.s32.totalorder (!%p341_p9), %s1746_s21, 1  ;;  %s2235_s0 = sld [smem:[#allocation5_spill]] (!%p341_p9)  ;;  %v1660_v4 = vmov (!%p341_p9), 0   ;;  %v928_v5 = vld [vmem:[%s2207_s3] sm:$0xf] (!%p341_p9)  ;;  %v419_v9 = vlaneseq (!%p341_p9)  ;;  %vm450_vm0 = vcmask (!%p341_p9), 130048  }
  0x10   : > { %344 = sbr.rel (%p341_p9) target bundleno = 1188 (0x4a4), region = 64  ;;  %s2222_s15 = smov (!%p341_p9), 15   ;;  %919 = vmatprep.mubr.bf16.mxu0 (!%p341_p9), %v1660_v4  ;;  %1579 = vset.pattern.permute.xlu0 (!%p341_p9), %v1660_v4  ;;  %v936_v6 = vld [vmem:[%s2208_s4] sm:$0xf] (!%p341_p9)  ;;  %v1663_v7 = vmov (!%p341_p9), 1966171168  }
  0x11   : > { %s2228_s16 = smov (!%p341_p9), 16   ;;  %s2218_s22 = smov (!%p341_p9), 17   ;;  %1580 = vset.pattern.permute.xlu1 (!%p341_p9), %v1660_v4  ;;  %1144 = vmatprep.mubr.bf16.mxu1 (!%p341_p9), %v1660_v4  ;;  %v417_v8 = vunpack.c.l.s4 (!%p341_p9), %v1663_v7  ;;  %v420_v11 = vshrl.u32 (!%p341_p9), %v419_v9, 7  ;;  %vm503_vm1 = vcmask (!%p341_p9), 121856   ;;  %vm398_vm2 = vcmask (!%p341_p9), 138240  }
  0x12   : > { %s2216_s24 = smov (!%p341_p9), 1   ;;  %s2230_s25 = smov (!%p341_p9), 127   ;;  %v1501_v12 = vld.sshfl [vmem:[%s2205_s1 + $0x2] sm:$0x11 pattern:$0x75316420] (!%p341_p9) }
  0x13   : > { %s2224_s12 = smov (!%p341_p9), 111   ;;  %v418_v10 = vunpack.c.0.s8 (!%p341_p9), %v417_v8  ;;  %v1503_v13 = vld.sshfl [vmem:[%s2205_s1 + $0x4] sm:$0x11 pattern:$0x75316420] (!%p341_p9)  ;;  %v468_v16 = vcombine.high (!%p341_p9), %v1501_v12, %v1501_v12  ;;  %v1845_v28 = vsub.s32 (!%p341_p9), 0, %v420_v11 }
  0x14   : > { %v1499_v14 = vld.sshfl [vmem:[%s2205_s1] sm:$0x11 pattern:$0x75316420] (!%p341_p9)  ;;  %v521_v17 = vcombine.high (!%p341_p9), %v1503_v13, %v1503_v13  ;;  %vm556_vm3 = vcmask (!%p341_p9), 7168   ;;  %vm609_vm4 = vcmask (!%p341_p9), 1039360  }
  0x15   : > { %v1833_v15 = vsub.s32 (!%p341_p9), %v418_v10, %v420_v11  ;;  %v415_v18 = vcombine.high (!%p341_p9), %v1499_v14, %v1499_v14  ;;  %v1505_v19 = vld.sshfl [vmem:[%s2205_s1 + $0x6] sm:$0x11 pattern:$0x75316420] (!%p341_p9)  ;;  %vm841_vm5 = vcmask (!%p341_p9), 1041408   ;;  %vm848_vm6 = vcmask (!%p341_p9), 1043456  }
  0x16   : > { %v574_v24 = vcombine.high (!%p341_p9), %v1505_v19, %v1505_v19  ;;  %v1507_v36 = vld.sshfl [vmem:[%s2205_s1 + $0xa] sm:$0x11 pattern:$0x75316420] (!%p341_p9)  ;;  %vm853_vm7 = vcmask (!%p341_p9), 1045504   ;;  %vm662_vm8 = vcmask (!%p341_p9), 924672  }
  0x17   : > { %s381_s29 = scalar_select %p380_p10, %s1746_s21, 1  ;;  %v475_v20 = vrot.slane %v1501_v12, %v1833_v15  ;;  %v482_v21 = vrot.slane %v468_v16, %v1833_v15  ;;  %v528_v22 = vrot.slane %v1503_v13, %v1833_v15  ;;  %v535_v23 = vrot.slane %v521_v17, %v1833_v15  ;;  %v1509_v39 = vld.sshfl [vmem:[%s2205_s1 + $0xc] sm:$0x11 pattern:$0x75316420] }
  0x18   : > { %v422_v25 = vrot.slane %v1499_v14, %v1833_v15  ;;  %v429_v26 = vrot.slane %v415_v18, %v1833_v15  ;;  %v581_v27 = vrot.slane %v1505_v19, %v1833_v15  ;;  %v588_v35 = vrot.slane %v574_v24, %v1833_v15  ;;  %v1511_v51 = vld.sshfl [vmem:[%s2205_s1 + $0xe] sm:$0x11 pattern:$0x75316420]  ;;  %s2238_s13 = smov 17  }
  0x19   : > { %s1528_s30 = sshll.u32 %s381_s29, 3  ;;  %s2226_s29 = smov 113   ;;  %v484_v29 = vpack.i.b16 %v475_v20, %v475_v20  ;;  %v491_v30 = vpack.i.b16 %v482_v21, %v482_v21  ;;  %v537_v33 = vpack.i.b16 %v528_v22, %v528_v22  ;;  %v544_v34 = vpack.i.b16 %v535_v23, %v535_v23  ;;  %v1513_v10 = vld.sshfl [vmem:[%s2205_s1 + $0x10] sm:$0x11 pattern:$0x75316420] }
  0x1a   : > { %s384_s14 = scalar_lea.vmem %s2235_s0, %s1528_s30  ;;  %s2220_s30 = smov 112   ;;  %v431_v37 = vpack.i.b16 %v422_v25, %v422_v25  ;;  %v438_v38 = vpack.i.b16 %v429_v26, %v429_v26  ;;  %v590_v40 = vpack.i.b16 %v581_v27, %v581_v27  ;;  %v627_v43 = vcombine.high %v1507_v36, %v1507_v36 }
  0x1b   : > { %v386_v0 = vld [vmem:[%s384_s14] sm:$0xff]  ;;  %v1855_v41 = vrot.slane %v484_v29, %v1845_v28  ;;  %v1858_v42 = vrot.slane %v491_v30, %v1845_v28  ;;  %v634_v44 = vrot.slane %v1507_v36, %v1833_v15  ;;  %v1862_v47 = vrot.slane %v537_v33, %v1845_v28  ;;  %s2239_s14 = smov 1  }
  0x1c   : > { %v1778_v1 = vpack.c.bf16 %v386_v0, %v386_v0  ;;  %v388_v2 = vcombine.high %v386_v0, %v386_v0  ;;  %v1865_v48 = vrot.slane %v544_v34, %v1845_v28  ;;  %v597_v49 = vpack.i.b16 %v588_v35, %v588_v35 }
  0x1d   : > { %v680_v50 = vcombine.high %v1509_v39, %v1509_v39  ;;  %v1873_v54 = vrot.slane %v431_v37, %v1845_v28  ;;  %v1876_v55 = vrot.slane %v438_v38, %v1845_v28  ;;  %v1879_v56 = vrot.slane %v590_v40, %v1845_v28 }
  0x1e   : > { %501 = vrot.lane.b32.xlu1 %v1778_v1, %s2222_s15  ;;  %448 = vrot.lane.b32.xlu0 %v1778_v1, %s2228_s16  ;;  %v1784_v3 = vpack.c.bf16 %v388_v2, %v388_v2  ;;  %v641_v57 = vrot.slane %v627_v43, %v1833_v15  ;;  %v643_v58 = vpack.i.b16 %v634_v44, %v634_v44  ;;  %vm715_vm9 = vcmask 916480  }
  0x1f   : > { %v687_v59 = vrot.slane %v1509_v39, %v1833_v15  ;;  %v733_v60 = vcombine.high %v1511_v51, %v1511_v51  ;;  %v1886_v2 = vrot.slane %v597_v49, %v1845_v28  ;;  %v740_v18 = vrot.slane %v1511_v51, %v1833_v15 }
  0x20   : > { %v650_v16 = vpack.i.b16 %v641_v57, %v641_v57  ;;  %v786_v25 = vcombine.high %v1513_v10, %v1513_v10  ;;  %v1909_v35 = vrot.slane %v643_v58, %v1845_v28  ;;  %v793_v58 = vrot.slane %v1513_v10, %v1833_v15 }
  0x21   : > { %v696_v17 = vpack.i.b16 %v687_v59, %v687_v59  ;;  %v747_v19 = vrot.slane %v733_v60, %v1833_v15  ;;  %v749_v38 = vpack.i.b16 %v740_v18, %v740_v18  ;;  %vm768_vm10 = vcmask 908288  }
  0x22   : > { %396 = vrot.lane.b32.xlu1 %v1778_v1, %s2218_s22  ;;  %446 = vrot.lane.b32.xlu0 %v1784_v3, %s2228_s16  ;;  %v1912_v36 = vrot.slane %v650_v16, %v1845_v28  ;;  %v800_v59 = vrot.slane %v786_v25, %v1833_v15  ;;  %vm877_vm11 = vcmask 293888  }
  0x23   : > { %v1915_v37 = vrot.slane %v696_v17, %v1845_v28 }
  0x24   : > { %v809_v10 = vpack.i.b16 %v800_v59, %v800_v59 }
  0x26   : > { %499 = vrot.lane.b32.xlu1 %v1784_v3, %s2222_s15  ;;  %393 = vrot.lane.b32.xlu0 %v1784_v3, %s2218_s22  ;;  %s2240_s22 = smov 112   ;;  %s2242_s15 = smov 127  }
  0x2a   : > { %554 = vrot.lane.b32.xlu1 %v1778_v1, %s2216_s24  ;;  %552 = vrot.lane.b32.xlu0 %v1784_v3, %s2216_s24  ;;  %s2241_s24 = smov 111  }
  0x2e   : > { %607 = vrot.lane.b32.xlu1 %v1784_v3, %s2230_s25  ;;  %605 = vrot.lane.b32.xlu0 %v1778_v1, %s2230_s25 }
  0x32   : > { %660 = vrot.lane.b32.xlu1 %v1784_v3, %s2226_s29  ;;  %658 = vrot.lane.b32.xlu0 %v1778_v1, %s2226_s29  ;;  %s2243_s29 = smov 16  }
  0x36   : > { %713 = vrot.lane.b32.xlu1 %v1784_v3, %s2220_s30  ;;  %711 = vrot.lane.b32.xlu0 %v1778_v1, %s2220_s30  ;;  %s2236_s30 = smov 113  }
  0x3a   : > { %766 = vrot.lane.b32.xlu1 %v1784_v3, %s2224_s12  ;;  %764 = vrot.lane.b32.xlu0 %v1778_v1, %s2224_s12  ;;  %s2237_s12 = smov 15  }
  0x3e   : > { %931 = vperm.xlu0 %1579, %v928_v5   ;;  %939 = vperm.xlu1 %1580, %v936_v6   ;;  %v694_v5 = vrot.slane %v680_v50, %v1833_v15 }
  0x40   : > { %v703_v24 = vpack.i.b16 %v694_v5, %v694_v5 }
  0x90   : > { %v502_v31 = vpop.permute.xlu1 %501  ;;  %v449_v32 = vpop.permute.xlu0 %448 }
  0x94   : > { %v397_v45 = vpop.permute.xlu1 %396  ;;  %v447_v46 = vpop.permute.xlu0 %446 }
  0x95   : > { %v451_v52 = vsel %vm450_vm0, %v449_v32, %v447_v46  ;;  %v456_v53 = vsel %vm450_vm0, %v447_v46, %v449_v32  ;;  %v756_v46 = vpack.i.b16 %v747_v19, %v747_v19 }
  0x96   : > { %v497_v61 = vmul.bf16 %v1855_v41, %v456_v53  ;;  %v498_v62 = vmul.bf16 %v1858_v42, %v451_v52 }
  0x98   : > { %v500_v63 = vpop.permute.xlu1 %499  ;;  %v394_v0 = vpop.permute.xlu0 %393  ;;  %v819_v20 = vrot.slane %v497_v61, 6  ;;  %v820_v21 = vrot.slane %v498_v62, 6 }
  0x99   : > { %v504_v6 = vsel %vm503_vm1, %v502_v31, %v500_v63  ;;  %v509_v7 = vsel %vm503_vm1, %v500_v63, %v502_v31  ;;  %v399_v8 = vsel %vm398_vm2, %v397_v45, %v394_v0  ;;  %v404_v9 = vsel %vm398_vm2, %v394_v0, %v397_v45 }
  0x9a   : > { %v550_v11 = vmul.bf16 %v1862_v47, %v509_v7  ;;  %v551_v12 = vmul.bf16 %v1865_v48, %v504_v6  ;;  %v444_v13 = vmul.bf16 %v1873_v54, %v404_v9  ;;  %v445_v14 = vmul.bf16 %v1876_v55, %v399_v8 }
  0x9b   : > { %v1918_v45 = vrot.slane %v703_v24, %v1845_v28  ;;  %v1933_v6 = vrot.slane %v749_v38, %v1845_v28  ;;  %v1936_v7 = vrot.slane %v756_v46, %v1845_v28  ;;  %v802_v9 = vpack.i.b16 %v793_v58, %v793_v58 }
  0x9c   : > { %v555_v22 = vpop.permute.xlu1 %554  ;;  %v553_v23 = vpop.permute.xlu0 %552  ;;  %v823_v26 = vrot.slane %v550_v11, 4  ;;  %v824_v27 = vrot.slane %v551_v12, 4  ;;  %v847_v33 = vsel %vm841_vm5, %v445_v14, %v820_v21  ;;  %v844_v34 = vsel %vm841_vm5, %v444_v13, %v819_v20 }
  0x9d   : > { %v557_v29 = vsel %vm556_vm3, %v555_v22, %v553_v23  ;;  %v562_v30 = vsel %vm556_vm3, %v553_v23, %v555_v22  ;;  %v1945_v22 = vrot.slane %v802_v9, %v1845_v28  ;;  %v1948_v23 = vrot.slane %v809_v10, %v1845_v28 }
  0x9e   : > { %v603_v31 = vmul.bf16 %v1879_v56, %v562_v30  ;;  %v604_v32 = vmul.bf16 %v1886_v2, %v557_v29  ;;  %v852_v51 = vsel %vm848_vm6, %v847_v33, %v824_v27  ;;  %v850_v52 = vsel %vm848_vm6, %v844_v34, %v823_v26 }
  0xa0   : > { %v827_v39 = vrot.slane %v603_v31, 2  ;;  %v828_v40 = vrot.slane %v604_v32, 2  ;;  %v608_v43 = vpop.permute.xlu1 %607  ;;  %v606_v44 = vpop.permute.xlu0 %605 }
  0xa1   : > { %v610_v49 = vsel %vm609_vm4, %v606_v44, %v608_v43  ;;  %v615_v50 = vsel %vm609_vm4, %v608_v43, %v606_v44 }
  0xa2   : > { %v858_v53 = vsel %vm853_vm7, %v852_v51, %v828_v40  ;;  %v855_v57 = vsel %vm853_vm7, %v850_v52, %v827_v39  ;;  %v656_v60 = vmul.bf16 %v1909_v35, %v610_v49  ;;  %v657_v61 = vmul.bf16 %v1912_v36, %v615_v50  ;;  %v876_v40 = vld [vmem:[%s2206_s2] sm:$0x3] }
  0xa3   : > { %887 = vmatprep.subr.bf16.mxu0 %v858_v53 }
  0xa4   : > { %v661_v62 = vpop.permute.xlu1 %660  ;;  %888 = vmatpush1.bf16.msra.mxu0 %v855_v57  ;;  %v659_v63 = vpop.permute.xlu0 %658  ;;  %v831_v11 = vrot.slane %v656_v60, 6  ;;  %v832_v12 = vrot.slane %v657_v61, 6 }
  0xa5   : > { %v663_v0 = vsel %vm662_vm8, %v659_v63, %v661_v62  ;;  %v668_v5 = vsel %vm662_vm8, %v661_v62, %v659_v63  ;;  %v1153_v62 = vld [vmem:[%s2210_s6] sm:$0xf] }
  0xa6   : > { %v709_v15 = vmul.bf16 %v1915_v37, %v663_v0  ;;  %v710_v8 = vmul.bf16 %v1918_v45, %v668_v5  ;;  %v865_v27 = vsel %vm841_vm5, %v1784_v3, %v832_v12  ;;  %v862_v30 = vsel %vm841_vm5, %v1778_v1, %v831_v11  ;;  %v1161_v63 = vld [vmem:[%s2211_s7] sm:$0xf] }
  0xa8   : > { %v714_v13 = vpop.permute.xlu1 %713  ;;  %v712_v14 = vpop.permute.xlu0 %711  ;;  %v835_v16 = vrot.slane %v709_v15, 4  ;;  %v836_v17 = vrot.slane %v710_v8, 4 }
  0xa9   : > { %v716_v18 = vsel %vm715_vm9, %v712_v14, %v714_v13  ;;  %v721_v19 = vsel %vm715_vm9, %v714_v13, %v712_v14 }
  0xaa   : > { %v762_v20 = vmul.bf16 %v1933_v6, %v716_v18  ;;  %v763_v21 = vmul.bf16 %v1936_v7, %v721_v19  ;;  %v869_v31 = vsel %vm848_vm6, %v865_v27, %v836_v17  ;;  %v867_v34 = vsel %vm848_vm6, %v862_v30, %v835_v16 }
  0xac   : > { %v839_v24 = vrot.slane %v762_v20, 2  ;;  %v840_v25 = vrot.slane %v763_v21, 2  ;;  %v767_v26 = vpop.permute.xlu1 %766  ;;  %v765_v29 = vpop.permute.xlu0 %764 }
  0xad   : > { %v769_v32 = vsel %vm768_vm10, %v765_v29, %v767_v26  ;;  %v774_v33 = vsel %vm768_vm10, %v767_v26, %v765_v29 }
  0xae   : > { %v874_v28 = vsel %vm853_vm7, %v869_v31, %v840_v25  ;;  %v815_v38 = vmul.bf16 %v1945_v22, %v769_v32  ;;  %v816_v39 = vmul.bf16 %v1948_v23, %v774_v33  ;;  %v871_v3 = vsel %vm853_vm7, %v867_v34, %v839_v24 }
  0xaf   : > { %889 = vmatprep.subr.bf16.mxu0 %v874_v28 }
  0xb0   : > { %890 = vmatpush1.bf16.msra.mxu0 %v871_v3  ;;  %v882_v1 = vsel %vm841_vm5, %v815_v38, 0 }
  0xb1   : > { %1514 = vmatprep.subr.msk.bf16.mxu0 %vm841_vm5, %v816_v39 }
  0xb4   : > { %892 = vmatpush1.bf16.msra.mxu0 %v882_v1 }
  0xb7   : > { %1515 = vmatmul.mubr.msk.bf16.vlgmr.msra.gmra.mrb[0].mxu0 %vm877_vm11, %v876_v40 }
  0xb8   : > { %1369 = vmatprep.mubr.bf16.mxu0 %v1660_v4 }
  0xbd   : > { %v932_v43 = vpop.permute.xlu0 %931  ;;  %v940_v46 = vpop.permute.xlu1 %939 }
 0x18a   : > { %v921_v44 = vpop.f32.mrb[0].mxu0 }
 0x18b   : > { %v934_v49 = vmul.f32 %v932_v43, %v921_v44  ;;  %v923_v50 = vpop.f32.mrb[1].mxu0 }
 0x18c   : > { %v925_v51 = vpop.f32.mrb[2].mxu0  ;;  %v935_v52 = vmul.f32 %v932_v43, %v923_v50 }
 0x18d   : > { %v942_v53 = vadd.f32 %v940_v46, %v934_v49  ;;  %v926_v57 = vpop.f32.mrb[3].mxu0 }
 0x18e   : > { %v943_v59 = vadd.f32 %v940_v46, %v935_v52 }
 0x18f   : > { %v944_v58 = vmax.f32 %v942_v53, 0.0 }
 0x190   : > { %v945_v4 = vmax.f32 %v943_v59, 0.0 }
 0x191   : > { %v1969_v60 = vpack.c.bf16 %v944_v58, %v944_v58 }
 0x192   : > { %v1979_v61 = vpack.c.bf16 %v945_v4, %v945_v4 }
 0x193   : > { %998 = vrot.lane.b32.xlu1 %v1969_v60, %s2230_s25  ;;  %964 = vrot.lane.b32.xlu0 %v1969_v60, %s2228_s16 }
 0x197   : > { %1010 = vrot.lane.b32.xlu1 %v1969_v60, %s2236_s30  ;;  %976 = vrot.lane.b32.xlu0 %v1969_v60, %s2237_s12 }
 0x19b   : > { %962 = vrot.lane.b32.xlu1 %v1979_v61, %s2228_s16  ;;  %952 = vrot.lane.b32.xlu0 %v1969_v60, %s2238_s13 }
 0x19f   : > { %974 = vrot.lane.b32.xlu1 %v1979_v61, %s2237_s12  ;;  %988 = vrot.lane.b32.xlu0 %v1969_v60, %s2239_s14 }
 0x1a3   : > { %949 = vrot.lane.b32.xlu1 %v1979_v61, %s2238_s13  ;;  %1000 = vrot.lane.b32.xlu0 %v1979_v61, %s2230_s25 }
 0x1a7   : > { %986 = vrot.lane.b32.xlu1 %v1979_v61, %s2239_s14  ;;  %1012 = vrot.lane.b32.xlu0 %v1979_v61, %s2236_s30 }
 0x1ab   : > { %1022 = vrot.lane.b32.xlu1 %v1969_v60, %s2240_s22  ;;  %1024 = vrot.lane.b32.xlu0 %v1979_v61, %s2240_s22 }
 0x1af   : > { %1034 = vrot.lane.b32.xlu1 %v1969_v60, %s2241_s24  ;;  %1036 = vrot.lane.b32.xlu0 %v1979_v61, %s2241_s24 }
 0x1b3   : > { %1156 = vperm.xlu1 %1580, %v1153_v62   ;;  %1164 = vperm.xlu0 %1579, %v1161_v63  }
 0x205   : > { %v999_v0 = vpop.permute.xlu1 %998  ;;  %v965_v5 = vpop.permute.xlu0 %964 }
 0x209   : > { %v1011_v15 = vpop.permute.xlu1 %1010  ;;  %v977_v8 = vpop.permute.xlu0 %976 }
 0x20d   : > { %v963_v9 = vpop.permute.xlu1 %962  ;;  %v953_v10 = vpop.permute.xlu0 %952 }
 0x20e   : > { %v966_v11 = vsel %vm450_vm0, %v965_v5, %v963_v9  ;;  %v970_v12 = vsel %vm450_vm0, %v963_v9, %v965_v5 }
 0x20f   : > { %v972_v18 = vmul.bf16 %v970_v12, %v1855_v41  ;;  %v973_v19 = vmul.bf16 %v966_v11, %v1858_v42 }
 0x211   : > { %v975_v13 = vpop.permute.xlu1 %974  ;;  %v989_v14 = vpop.permute.xlu0 %988  ;;  %v1048_v31 = vrot.slane %v972_v18, 6  ;;  %v1049_v32 = vrot.slane %v973_v19, 6 }
 0x212   : > { %v978_v16 = vsel %vm503_vm1, %v977_v8, %v975_v13  ;;  %v982_v17 = vsel %vm503_vm1, %v975_v13, %v977_v8 }
 0x213   : > { %v984_v20 = vmul.bf16 %v982_v17, %v1862_v47  ;;  %v985_v21 = vmul.bf16 %v978_v16, %v1865_v48 }
 0x215   : > { %v950_v24 = vpop.permute.xlu1 %949  ;;  %v1001_v25 = vpop.permute.xlu0 %1000  ;;  %v1052_v39 = vrot.slane %v984_v20, 4  ;;  %v1053_v3 = vrot.slane %v985_v21, 4 }
 0x216   : > { %v954_v26 = vsel %vm398_vm2, %v953_v10, %v950_v24  ;;  %v958_v27 = vsel %vm398_vm2, %v950_v24, %v953_v10  ;;  %v1002_v29 = vsel %vm609_vm4, %v999_v0, %v1001_v25  ;;  %v1006_v30 = vsel %vm609_vm4, %v1001_v25, %v999_v0 }
 0x217   : > { %v960_v33 = vmul.bf16 %v958_v27, %v1873_v54  ;;  %v961_v34 = vmul.bf16 %v954_v26, %v1876_v55  ;;  %v1008_v28 = vmul.bf16 %v1002_v29, %v1909_v35  ;;  %v1009_v38 = vmul.bf16 %v1006_v30, %v1912_v36 }
 0x219   : > { %v987_v1 = vpop.permute.xlu1 %986  ;;  %v1013_v40 = vpop.permute.xlu0 %1012  ;;  %v1075_v43 = vsel %vm841_vm5, %v961_v34, %v1049_v32  ;;  %v1072_v44 = vsel %vm841_vm5, %v960_v33, %v1048_v31  ;;  %v1060_v59 = vrot.slane %v1008_v28, 6  ;;  %v1061_v4 = vrot.slane %v1009_v38, 6 }
 0x21a   : > { %v990_v46 = vsel %vm556_vm3, %v989_v14, %v987_v1  ;;  %v994_v49 = vsel %vm556_vm3, %v987_v1, %v989_v14  ;;  %v1014_v50 = vsel %vm662_vm8, %v1011_v15, %v1013_v40  ;;  %v1018_v51 = vsel %vm662_vm8, %v1013_v40, %v1011_v15 }
 0x21b   : > { %v996_v52 = vmul.bf16 %v994_v49, %v1879_v56  ;;  %v997_v53 = vmul.bf16 %v990_v46, %v1886_v2  ;;  %v1020_v57 = vmul.bf16 %v1014_v50, %v1915_v37  ;;  %v1021_v58 = vmul.bf16 %v1018_v51, %v1918_v45 }
 0x21c   : > { %v1079_v8 = vsel %vm848_vm6, %v1075_v43, %v1053_v3  ;;  %v1077_v9 = vsel %vm848_vm6, %v1072_v44, %v1052_v39  ;;  %v1091_v24 = vsel %vm841_vm5, %v1979_v61, %v1061_v4  ;;  %v1088_v25 = vsel %vm841_vm5, %v1969_v60, %v1060_v59  ;;  %v1102_v61 = vld [vmem:[%s2209_s5] sm:$0x3] }
 0x21d   : > { %v1056_v62 = vrot.slane %v996_v52, 2  ;;  %v1057_v63 = vrot.slane %v997_v53, 2  ;;  %v1023_v0 = vpop.permute.xlu1 %1022  ;;  %v1025_v5 = vpop.permute.xlu0 %1024  ;;  %v1064_v10 = vrot.slane %v1020_v57, 4  ;;  %v1065_v15 = vrot.slane %v1021_v58, 4  ;;  %v1378_v57 = vld [vmem:[%s2213_s9] sm:$0x3] }
 0x21e   : > { %v1026_v11 = vsel %vm715_vm9, %v1023_v0, %v1025_v5  ;;  %v1030_v12 = vsel %vm715_vm9, %v1025_v5, %v1023_v0  ;;  %v1386_v58 = vld [vmem:[%s2214_s10] sm:$0x3] }
 0x21f   : > { %v1032_v13 = vmul.bf16 %v1026_v11, %v1933_v6  ;;  %v1033_v14 = vmul.bf16 %v1030_v12, %v1936_v7  ;;  %v1084_v16 = vsel %vm853_vm7, %v1079_v8, %v1057_v63  ;;  %v1081_v17 = vsel %vm853_vm7, %v1077_v9, %v1056_v62 }
 0x220   : > { %1112 = vmatprep.subr.bf16.mxu1 %v1084_v16  ;;  %v1095_v29 = vsel %vm848_vm6, %v1091_v24, %v1065_v15  ;;  %v1093_v30 = vsel %vm848_vm6, %v1088_v25, %v1064_v10 }
 0x221   : > { %v1068_v18 = vrot.slane %v1032_v13, 2  ;;  %v1069_v19 = vrot.slane %v1033_v14, 2  ;;  %v1035_v20 = vpop.permute.xlu1 %1034  ;;  %1113 = vmatpush1.bf16.msra.mxu1 %v1081_v17  ;;  %v1037_v21 = vpop.permute.xlu0 %1036 }
 0x222   : > { %v1038_v26 = vsel %vm768_vm10, %v1035_v20, %v1037_v21  ;;  %v1042_v27 = vsel %vm768_vm10, %v1037_v21, %v1035_v20 }
 0x223   : > { %v1045_v31 = vmul.bf16 %v1042_v27, %v1948_v23  ;;  %v1100_v32 = vsel %vm853_vm7, %v1095_v29, %v1069_v19  ;;  %v1097_v33 = vsel %vm853_vm7, %v1093_v30, %v1068_v18  ;;  %v1044_v34 = vmul.bf16 %v1038_v26, %v1945_v22 }
 0x224   : > { %1114 = vmatprep.subr.bf16.mxu1 %v1100_v32 }
 0x225   : > { %1115 = vmatpush1.bf16.msra.mxu1 %v1097_v33  ;;  %v1107_v60 = vsel %vm841_vm5, %v1044_v34, 0 }
 0x226   : > { %1516 = vmatprep.subr.msk.bf16.mxu1 %vm841_vm5, %v1045_v31 }
 0x229   : > { %1117 = vmatpush1.bf16.msra.mxu1 %v1107_v60 }
 0x22c   : > { %1517 = vmatmul.mubr.msk.bf16.vlgmr.msra.gmra.mrb[0].mxu1 %vm877_vm11, %v1102_v61 }
 0x232   : > { %v1157_v28 = vpop.permute.xlu1 %1156  ;;  %v1165_v1 = vpop.permute.xlu0 %1164 }
 0x2ff   : > { %v1146_v38 = vpop.f32.mrb[0].mxu1 }
 0x300   : > { %v1159_v39 = vmul.f32 %v1157_v28, %v1146_v38  ;;  %v1148_v3 = vpop.f32.mrb[1].mxu1 }
 0x301   : > { %v1150_v40 = vpop.f32.mrb[2].mxu1  ;;  %v1160_v44 = vmul.f32 %v1157_v28, %v1148_v3 }
 0x302   : > { %v1167_v43 = vadd.f32 %v1165_v1, %v1159_v39  ;;  %v1151_v46 = vpop.f32.mrb[3].mxu1 }
 0x303   : > { %v1168_v51 = vadd.f32 %v1165_v1, %v1160_v44 }
 0x304   : > { %v1169_v49 = vmax.f32 %v1167_v43, 0.0 }
 0x305   : > { %v1170_v52 = vmax.f32 %v1168_v51, 0.0 }
 0x306   : > { %v2063_v50 = vpack.c.bf16 %v1169_v49, %v1169_v49 }
 0x307   : > { %v2073_v53 = vpack.c.bf16 %v1170_v52, %v1170_v52 }
 0x308   : > { %1223 = vrot.lane.b32.xlu1 %v2063_v50, %s2242_s15  ;;  %1189 = vrot.lane.b32.xlu0 %v2063_v50, %s2243_s29 }
 0x30c   : > { %1235 = vrot.lane.b32.xlu1 %v2063_v50, %s2236_s30  ;;  %1201 = vrot.lane.b32.xlu0 %v2063_v50, %s2237_s12 }
 0x310   : > { %1187 = vrot.lane.b32.xlu1 %v2073_v53, %s2243_s29  ;;  %1177 = vrot.lane.b32.xlu0 %v2063_v50, %s2238_s13 }
 0x314   : > { %1199 = vrot.lane.b32.xlu1 %v2073_v53, %s2237_s12  ;;  %1213 = vrot.lane.b32.xlu0 %v2063_v50, %s2239_s14 }
 0x318   : > { %1174 = vrot.lane.b32.xlu1 %v2073_v53, %s2238_s13  ;;  %1225 = vrot.lane.b32.xlu0 %v2073_v53, %s2242_s15  ;;  %s1529_s15 = sshll.u32 %s1746_s21, 6  ;;  %s1664_s21 = smov [#allocation2]  }
 0x319   : > { %s2162_s16 = scalar_lea.hbm %s2215_s11, %s1529_s15 }
 0x31c   : > { %1211 = vrot.lane.b32.xlu1 %v2073_v53, %s2239_s14  ;;  %1237 = vrot.lane.b32.xlu0 %v2073_v53, %s2236_s30 }
 0x320   : > { %1247 = vrot.lane.b32.xlu1 %v2063_v50, %s2240_s22  ;;  %1249 = vrot.lane.b32.xlu0 %v2073_v53, %s2240_s22 }
 0x324   : > { %1259 = vrot.lane.b32.xlu1 %v2063_v50, %s2241_s24  ;;  %1261 = vrot.lane.b32.xlu0 %v2073_v53, %s2241_s24  ;;  %s377_s24 = sand.u32 1, %s1644_s18  }
 0x325   : > { %s1496_s25 = sshll.u32 %s377_s24, 2  ;;  %s1419_s30 = scalar_lea.sflag [#allocation3], %s377_s24 }
 0x326   : > { %s379_s29 = scalar_lea.vmem [#allocation2], %s1496_s25  ;;  %s1594_s25 = sshll.u32 %s1664_s21, 4  ;;  %s1595_s25 = int_to_ptr.vmem [resolvable:$false] %s1594_s25 }
 0x327   : > { %s1433_s12 = sshll.u32 %s379_s29, 4  ;;  %s1596_s0 = scalar_lea.vmem %s1595_s25, 128  ;;  %s2164_s12 = int_to_ptr.vmem [resolvable:$true] %s1433_s12 }
 0x328   : > { %1381 = vperm.xlu1 %1580, %v1378_v57   ;;  %1389 = vperm.xlu0 %1579, %v1386_v58   ;;  %s1590_s22 = scalar_lea.vmem %s2164_s12, 64  ;;  %p1597_p0 = scmp.lt.s32.totalorder %s2164_s12, %s1595_s25 }
 0x329   : > { %p1591_p11 = scmp.ne.s32.totalorder %s2164_s12, %s1590_s22  ;;  %p1598_p1 = scmp.lt.s32.totalorder %s1596_s0, %s1590_s22 }
 0x32b   : > { %p1592_p12 = pnand %p1591_p11, %p1763_p5  ;;  %p1599_p2 = por %p1598_p1, %p1597_p0 }
 0x32d   : > { %p1593_p13 = pneg %p1592_p12 }
 0x32f   : > { %p1600_p3 = pnand %p1599_p2, %p1593_p13 }
 0x37a   : > { %v1224_v59 = vpop.permute.xlu1 %1223  ;;  %v1190_v4 = vpop.permute.xlu0 %1189 }
 0x37e   : > { %v1236_v62 = vpop.permute.xlu1 %1235  ;;  %v1202_v63 = vpop.permute.xlu0 %1201 }
 0x382   : > { %v1188_v0 = vpop.permute.xlu1 %1187  ;;  %v1178_v5 = vpop.permute.xlu0 %1177 }
 0x383   : > { %v1195_v8 = vsel %vm450_vm0, %v1188_v0, %v1190_v4  ;;  %v1191_v9 = vsel %vm450_vm0, %v1190_v4, %v1188_v0 }
 0x384   : > { %v1197_v10 = vmul.bf16 %v1195_v8, %v1855_v41  ;;  %v1198_v13 = vmul.bf16 %v1191_v9, %v1858_v42 }
 0x386   : > { %v1200_v15 = vpop.permute.xlu1 %1199  ;;  %v1214_v11 = vpop.permute.xlu0 %1213  ;;  %v1273_v16 = vrot.slane %v1197_v10, 6  ;;  %v1274_v25 = vrot.slane %v1198_v13, 6 }
 0x387   : > { %v1207_v12 = vsel %vm503_vm1, %v1200_v15, %v1202_v63  ;;  %v1203_v14 = vsel %vm503_vm1, %v1202_v63, %v1200_v15 }
 0x388   : > { %v1209_v17 = vmul.bf16 %v1207_v12, %v1862_v47  ;;  %v1210_v26 = vmul.bf16 %v1203_v14, %v1865_v48  ;;  %v1327_v12 = vld [vmem:[%s2212_s8] sm:$0x1] }
 0x38a   : > { %v1175_v18 = vpop.permute.xlu1 %1174  ;;  %v1226_v19 = vpop.permute.xlu0 %1225  ;;  %v1277_v30 = vrot.slane %v1209_v17, 4 }
 0x38b   : > { %v1179_v20 = vsel %vm398_vm2, %v1178_v5, %v1175_v18  ;;  %v1183_v21 = vsel %vm398_vm2, %v1175_v18, %v1178_v5  ;;  %v1227_v24 = vsel %vm609_vm4, %v1224_v59, %v1226_v19  ;;  %v1231_v41 = vsel %vm609_vm4, %v1226_v19, %v1224_v59 }
 0x38c   : > { %v1185_v42 = vmul.bf16 %v1183_v21, %v1873_v54  ;;  %v1186_v27 = vmul.bf16 %v1179_v20, %v1876_v55  ;;  %v1233_v29 = vmul.bf16 %v1227_v24, %v1909_v35  ;;  %v1234_v47 = vmul.bf16 %v1231_v41, %v1912_v36 }
 0x38d   : > { %v1278_v55 = vrot.slane %v1210_v26, 4 }
 0x38e   : > { %v1297_v31 = vsel %vm841_vm5, %v1185_v42, %v1273_v16  ;;  %v1212_v32 = vpop.permute.xlu1 %1211  ;;  %v1238_v33 = vpop.permute.xlu0 %1237  ;;  %v1300_v34 = vsel %vm841_vm5, %v1186_v27, %v1274_v25  ;;  %v1285_v38 = vrot.slane %v1233_v29, 6  ;;  %v1286_v39 = vrot.slane %v1234_v47, 6 }
 0x38f   : > { %v1215_v60 = vsel %vm556_vm3, %v1214_v11, %v1212_v32  ;;  %v1219_v61 = vsel %vm556_vm3, %v1212_v32, %v1214_v11  ;;  %v1239_v48 = vsel %vm662_vm8, %v1236_v62, %v1238_v33  ;;  %v1243_v54 = vsel %vm662_vm8, %v1238_v33, %v1236_v62 }
 0x390   : > { %v1221_v35 = vmul.bf16 %v1219_v61, %v1879_v56  ;;  %v1222_v36 = vmul.bf16 %v1215_v60, %v1886_v2  ;;  %v1245_v28 = vmul.bf16 %v1239_v48, %v1915_v37  ;;  %v1246_v3 = vmul.bf16 %v1243_v54, %v1918_v45 }
 0x391   : > { %v1304_v46 = vsel %vm848_vm6, %v1300_v34, %v1278_v55  ;;  %v1302_v49 = vsel %vm848_vm6, %v1297_v31, %v1277_v30  ;;  %v1313_v59 = vsel %vm841_vm5, %v2063_v50, %v1285_v38  ;;  %v1316_v5 = vsel %vm841_vm5, %v2073_v53, %v1286_v39 }
 0x392   : > { %v1281_v1 = vrot.slane %v1221_v35, 2  ;;  %v1282_v40 = vrot.slane %v1222_v36, 2  ;;  %v1248_v43 = vpop.permute.xlu1 %1247  ;;  %v1250_v44 = vpop.permute.xlu0 %1249  ;;  %v1289_v51 = vrot.slane %v1245_v28, 4  ;;  %v1290_v52 = vrot.slane %v1246_v3, 4 }
 0x393   : > { %v1251_v56 = vsel %vm715_vm9, %v1248_v43, %v1250_v44  ;;  %v1255_v2 = vsel %vm715_vm9, %v1250_v44, %v1248_v43 }
 0x394   : > { %v1257_v37 = vmul.bf16 %v1251_v56, %v1933_v6  ;;  %v1258_v57 = vmul.bf16 %v1255_v2, %v1936_v7  ;;  %v1309_v45 = vsel %vm853_vm7, %v1304_v46, %v1282_v40  ;;  %v1306_v58 = vsel %vm853_vm7, %v1302_v49, %v1281_v1 }
 0x395   : > { %1337 = vmatprep.subr.bf16.mxu0 %v1309_v45  ;;  %v1320_v8 = vsel %vm848_vm6, %v1316_v5, %v1290_v52  ;;  %v1318_v9 = vsel %vm848_vm6, %v1313_v59, %v1289_v51 }
 0x396   : > { %v1293_v4 = vrot.slane %v1257_v37, 2  ;;  %v1294_v62 = vrot.slane %v1258_v57, 2  ;;  %v1260_v63 = vpop.permute.xlu1 %1259  ;;  %1338 = vmatpush1.bf16.msra.mxu0 %v1306_v58  ;;  %v1262_v0 = vpop.permute.xlu0 %1261 }
 0x397   : > { %v1263_v6 = vsel %vm768_vm10, %v1260_v63, %v1262_v0  ;;  %v1267_v7 = vsel %vm768_vm10, %v1262_v0, %v1260_v63 }
 0x398   : > { %v1270_v10 = vmul.bf16 %v1267_v7, %v1948_v23  ;;  %v1325_v50 = vsel %vm853_vm7, %v1320_v8, %v1294_v62  ;;  %v1322_v15 = vsel %vm853_vm7, %v1318_v9, %v1293_v4  ;;  %v1269_v11 = vmul.bf16 %v1263_v6, %v1945_v22 }
 0x399   : > { %1339 = vmatprep.subr.bf16.mxu0 %v1325_v50 }
 0x39a   : > { %1340 = vmatpush1.bf16.msra.mxu0 %v1322_v15  ;;  %v1332_v53 = vsel %vm841_vm5, %v1269_v11, 0 }
 0x39b   : > { %1518 = vmatprep.subr.msk.bf16.mxu0 %vm841_vm5, %v1270_v10 }
 0x39e   : > { %1342 = vmatpush1.bf16.msra.mxu0 %v1332_v53 }
 0x3a1   : > { %1519 = vmatmul.mubr.msk.bf16.vlgmr.msra.gmra.mrb[4].mxu0 %vm877_vm11, %v1327_v12 }
 0x3a7   : > { %v1382_v23 = vpop.permute.xlu1 %1381  ;;  %v1390_v17 = vpop.permute.xlu0 %1389 }
 0x474   : > { %v1371_v13 = vpop.f32.mrb[4].mxu0 }
 0x475   : > { %v1384_v14 = vmul.f32 %v1382_v23, %v1371_v13  ;;  %v1373_v16 = vpop.f32.mrb[5].mxu0 }
 0x476   : > { %v1385_v22 = vmul.f32 %v1382_v23, %v1373_v16  ;;  %v1375_v18 = vpop.f32.mrb[6].mxu0 }
 0x477   : > { %v1392_v19 = vadd.f32 %v1390_v17, %v1384_v14  ;;  %v1376_v20 = vpop.f32.mrb[7].mxu0 }
 0x478   : > { %v1393_v21 = vadd.f32 %v1390_v17, %v1385_v22 }
 0x479   : > { %v1520_v24 = vmul.f32 -1.442695, %v1392_v19 }
 0x47a   : > { %v1521_v41 = vmul.f32 -1.442695, %v1393_v21 }
 0x47b   : > { %1582 = vpow2.f32 %v1520_v24 }
 0x47c   : > { %1584 = vpow2.f32 %v1521_v41 }
 0x485   : > { %v1583_v25 = vpop.eup %1582 }
 0x486   : > { %v1585_v26 = vpop.eup %1584  ;;  %v1400_v42 = vadd.f32 1.0, %v1583_v25 }
 0x487   : > { %v1401_v27 = vadd.f32 1.0, %v1585_v26 }
 0x488   : > { %1586 = vrcp.f32 %v1400_v42 }
 0x489   : > { %1588 = vrcp.f32 %v1401_v27 }
 0x492   : > { %v1587_v29 = vpop.eup %1586 }
 0x493   : > { %v1589_v47 = vpop.eup %1588 }
 0x494   : > { %v1408_v30 = vcombine.low %v1587_v29, %v1589_v47 }
 0x496   : > { %1522 = vst.sshfl [vmem:[%s379_s29] sm:$0x33 pattern:$0x76325410] %v1408_v30 }
 0x497   : > { %1603 = shalt.err (!%p1600_p3)
}
 0x498   : > { %s1604_s24 = scalar_lea.hbm %s2162_s16, 64  ;;  %s1608_s13 = scalar_lea.hbm %s2215_s11, 128 }
 0x499   : > { %p1605_p4 = scmp.ne.s32.totalorder %s2162_s16, %s1604_s24  ;;  %p1609_p9 = scmp.lt.u32.totalorder %s2162_s16, %s2215_s11 }
 0x49a   : > { %p1610_p10 = scmp.lt.u32.totalorder %s1608_s13, %s1604_s24  ;;  %p1612_p12 = scmp.lt.u32.totalorder %s1604_s24, %s2162_s16 }
 0x49b   : > { %p1606_p7 = pnand %p1605_p4, %p1763_p5 }
 0x49c   : > { %p1611_p11 = por %p1610_p10, %p1609_p9 }
 0x49d   : > { %p1607_p8 = pneg %p1606_p7 }
 0x49e   : > { %p1613_p13 = por %p1612_p12, %p1611_p11 }
 0x4a0   : > { %p1614_p0 = pnand %p1613_p13, %p1607_p8 }
 0x4a2   : > { %1617 = shalt.err (!%p1614_p0)
}
 0x4a3   : > { %1530 = dma.vmem_to_hbm [thread:$0]  (%p1763_p5), %s2164_s12, 64, %s2162_s16, %s1419_s30  }
 0x4a4 PF: > { %p1536_p1 = scmp.ge.s32.totalorder %s1652_s20, 2  ;;  %s1445_s0 = sand.u32 1, %s1640_s17  }
 0x4a5   : > { %s1446_s22 = scalar_lea.sflag [#allocation3], %s1445_s0 }
 0x4a6   : > { %p1533_p2 = pnand %p1536_p1, %p1767_p6 }
 0x4a8   : > { %1635 = dma.done.wait (!%p1533_p2), %s1446_s22, 64  }
 0x4a9   : > { %1637 = vsyncadd (!%p1533_p2), %s1446_s22, 4294967232  ;;  %p21_p3 = scmp.ge.s32.totalorder %s1750_s23, 4   ;;  %s2244_s17 = smov %s1644_s18 }
 0x4aa   : > { %s2245_s18 = smov %s1648_s19  ;;  %s2246_s19 = smov %s1761_s26 }
 0x4ab   : > { %s2247_s20 = smov %s1750_s23  ;;  %23 = sbr.rel (!%p21_p3) target bundleno = 5 (0x5), region = 106 }
 0x4b2   :  { %1451 = vsyncpa [#allocation3], 1 }
 0x4b3   :  { %1453 = vsyncpa [#allocation3 + $0x1], 1 }

</bundles_post_ra>
